<compile_context>
chip_gen: v5e
topology: v5e:2x2
jax: 0.10.0
libtpu: 0.0.40
codegen_flags: <defaults>
</compile_context>

<pallas_src>
import functools
import math

import jax
import jax.numpy as jnp
from jax import lax
from jax.experimental import pallas as pl
from jax.experimental.pallas import tpu as pltpu


_VMEM_LIMIT = 48 * 1024 * 1024  # above the 32 MiB scoped default, still <= v7x's 64 MiB physical


def _pick_tile(dim, pref, quantum=128):
    """Largest multiple-of-`quantum` tile <= pref that exactly divides dim (or dim if small)."""
    if dim <= pref:
        return dim
    t = (pref // quantum) * quantum
    while t >= quantum:
        if dim % t == 0:
            return t
        t -= quantum
    return dim  # fallback: untiled along this axis


# --------------------------- tiled linear (+bias, +activation) ---------------------------

def _linear_kernel(x_ref, w_ref, b_ref, o_ref, acc_ref, *, activation):
    @pl.when(pl.program_id(2) == 0)
    def _():
        acc_ref[...] = jnp.zeros_like(acc_ref)

    acc_ref[...] += jnp.dot(
        x_ref[...].astype(jnp.bfloat16),
        w_ref[...].astype(jnp.bfloat16),
        preferred_element_type=jnp.float32,
    )

    @pl.when(pl.program_id(2) == pl.num_programs(2) - 1)
    def _():
        y = acc_ref[...] + b_ref[...].astype(jnp.float32)
        if activation == "gelu":
            # TODO(synk): tanh-approximate GELU; PyTorch nn.GELU defaults to exact erf.
            c = jnp.float32(math.sqrt(2.0 / math.pi))
            y = 0.5 * y * (1.0 + jnp.tanh(c * (y + 0.044715 * y * y * y)))
        elif activation == "tanh":
            y = jnp.tanh(y)
        o_ref[...] = y.astype(o_ref.dtype)


def linear(x, w, b, activation=None, out_dtype=jnp.bfloat16, tm=512, tn=768, tk=768):
    """y = x @ w + b (+ fused activation). x:(M,K), w:(K,N), b:(N,)."""
    M, K = x.shape
    N = w.shape[1]
    tm = _pick_tile(M, tm, quantum=8)
    tn = _pick_tile(N, tn)
    tk = _pick_tile(K, tk)
    grid = (M // tm, N // tn, K // tk)
    # TODO(synk): if weight DMA is exposed at small M, deepen the weight pipeline with
    # pl.BlockSpec(..., pipeline_mode=pl.Buffered(3)) on the w spec.
    return pl.pallas_call(
        functools.partial(_linear_kernel, activation=activation),
        out_shape=jax.ShapeDtypeStruct((M, N), out_dtype),
        grid=grid,
        in_specs=[
            pl.BlockSpec((tm, tk), lambda i, j, k: (i, k)),
            pl.BlockSpec((tk, tn), lambda i, j, k: (k, j)),
            pl.BlockSpec((1, tn), lambda i, j, k: (0, j)),
        ],
        out_specs=pl.BlockSpec((tm, tn), lambda i, j, k: (i, j)),
        scratch_shapes=[pltpu.VMEM((tm, tn), jnp.float32)],
        compiler_params=pltpu.CompilerParams(
            dimension_semantics=("parallel", "parallel", "arbitrary"),
            vmem_limit_bytes=_VMEM_LIMIT),
    )(x, w, b.reshape(1, N))


# ------------------ linear with residual-add + LayerNorm fused in the epilogue -----------

def _linear_ln_kernel(x_ref, w_ref, b_ref, r_ref, g_ref, beta_ref, o_ref, acc_ref, *, eps):
    @pl.when(pl.program_id(1) == 0)
    def _():
        acc_ref[...] = jnp.zeros_like(acc_ref)

    acc_ref[...] += jnp.dot(
        x_ref[...].astype(jnp.bfloat16),
        w_ref[...].astype(jnp.bfloat16),
        preferred_element_type=jnp.float32,
    )

    @pl.when(pl.program_id(1) == pl.num_programs(1) - 1)
    def _():
        y = acc_ref[...] + b_ref[...].astype(jnp.float32) + r_ref[...].astype(jnp.float32)
        mu = jnp.mean(y, axis=-1, keepdims=True)
        yc = y - mu
        var = jnp.mean(yc * yc, axis=-1, keepdims=True)
        y = yc * lax.rsqrt(var + eps)
        o_ref[...] = (y * g_ref[...].astype(jnp.float32)
                      + beta_ref[...].astype(jnp.float32)).astype(o_ref.dtype)


def linear_ln(x, w, b, residual, g, beta, eps=1e-12, out_dtype=jnp.bfloat16, tm=512, tk=768):
    """LayerNorm((x @ w + b) + residual) * g + beta, LN fused into the GEMM epilogue.

    Requires the full output width N as one tile (true for the H-output projections wo/w2),
    which removes a full HBM write+read of the (M, N) activation vs. a standalone LN call.
    """
    M, K = x.shape
    N = w.shape[1]
    tm = _pick_tile(M, tm, quantum=8)
    tk = _pick_tile(K, tk)
    grid = (M // tm, K // tk)
    row_out = pl.BlockSpec((tm, N), lambda i, k: (i, 0))
    vec = pl.BlockSpec((1, N), lambda i, k: (0, 0))
    return pl.pallas_call(
        functools.partial(_linear_ln_kernel, eps=eps),
        out_shape=jax.ShapeDtypeStruct((M, N), out_dtype),
        grid=grid,
        in_specs=[
            pl.BlockSpec((tm, tk), lambda i, k: (i, k)),
            pl.BlockSpec((tk, N), lambda i, k: (k, 0)),
            vec,        # bias
            row_out,    # residual (same block index across k -> fetched once per row tile)
            vec,        # gamma
            vec,        # beta
        ],
        out_specs=row_out,
        scratch_shapes=[pltpu.VMEM((tm, N), jnp.float32)],
        compiler_params=pltpu.CompilerParams(
            dimension_semantics=("parallel", "arbitrary"),
            vmem_limit_bytes=_VMEM_LIMIT),
    )(x, w, b.reshape(1, N), residual, g.reshape(1, N), beta.reshape(1, N))


# ------------------------------ standalone layernorm (embeddings) ------------------------

def _layernorm_kernel(x_ref, g_ref, b_ref, o_ref, *, eps):
    x = x_ref[...].astype(jnp.float32)
    mu = jnp.mean(x, axis=-1, keepdims=True)
    xc = x - mu
    var = jnp.mean(xc * xc, axis=-1, keepdims=True)
    y = xc * lax.rsqrt(var + eps)
    o_ref[...] = (y * g_ref[...].astype(jnp.float32)
                  + b_ref[...].astype(jnp.float32)).astype(o_ref.dtype)


def layernorm(x, g, b, eps=1e-12, tm=512):
    M, H = x.shape
    tm = _pick_tile(M, tm, quantum=8)
    row = pl.BlockSpec((tm, H), lambda i: (i, 0))
    vec = pl.BlockSpec((1, H), lambda i: (0, 0))
    return pl.pallas_call(
        functools.partial(_layernorm_kernel, eps=eps),
        out_shape=jax.ShapeDtypeStruct((M, H), jnp.bfloat16),
        grid=(M // tm,),
        in_specs=[row, vec, vec],
        out_specs=row,
        compiler_params=pltpu.CompilerParams(
            dimension_semantics=("parallel",),
            vmem_limit_bytes=_VMEM_LIMIT),
    )(x, g.reshape(1, H), b.reshape(1, H))


# ------------------------------- multi-head self-attention -------------------------------

def _attention_kernel(q_ref, k_ref, v_ref, mask_ref, o_ref, *, dh):
    """One (batch, head-pair) step: two heads live in one lane-aligned (S, 2*dh) block."""
    m = mask_ref[0].astype(jnp.float32)                    # (1, S) additive mask
    q = q_ref[...]                                         # (S, 2*dh) bf16, scale pre-folded
    k = k_ref[...]
    v = v_ref[...]
    ctx = []
    for i in range(2):                                     # the two heads of this pair
        qi = q[:, i * dh:(i + 1) * dh]
        ki = k[:, i * dh:(i + 1) * dh]
        vi = v[:, i * dh:(i + 1) * dh]
        # QK^T without transposing k: contract last dims of both operands on the MXU.
        s = lax.dot_general(qi, ki, (((1,), (1,)), ((), ())),
                            preferred_element_type=jnp.float32)
        s = s + m
        s = s - jnp.max(s, axis=-1, keepdims=True)
        p = jnp.exp(s)
        p = p * pl.reciprocal(jnp.sum(p, axis=-1, keepdims=True), approx=True)
        ctx.append(jnp.dot(p.astype(jnp.bfloat16), vi, preferred_element_type=jnp.float32))
    # single lane-dense (S, 2*dh) store (128 lanes at BERT head width).
    o_ref[...] = jnp.concatenate(ctx, axis=-1).astype(o_ref.dtype)


def attention(qkv, add_mask, B, S, nh, dh):
    """qkv: (B*S, 3H) fused Q|K|V projections (1/sqrt(dh) folded into Q); add_mask: (B,1,S)."""
    assert nh % 2 == 0, "head pairing requires an even number of heads"
    H = nh * dh
    npairs = nh // 2
    pair = 2 * dh
    # TODO(synk): for long sequences add KV tiling (flash-style online softmax) so the per-step
    # (S, S) f32 score intermediate stays bounded on v7x's 64 MiB VMEM.
    return pl.pallas_call(
        functools.partial(_attention_kernel, dh=dh),
        out_shape=jax.ShapeDtypeStruct((B * S, H), jnp.bfloat16),
        grid=(B, npairs),
        in_specs=[
            # three views of the same (B*S, 3H) array: only the (S, 2*dh) tiles this
            # (batch, head-pair) step needs are DMA'd; offsets are 2*dh-lane aligned.
            pl.BlockSpec((S, pair), lambda b, p: (b, p)),                   # Q pair
            pl.BlockSpec((S, pair), lambda b, p: (b, npairs + p)),          # K pair
            pl.BlockSpec((S, pair), lambda b, p: (b, 2 * npairs + p)),      # V pair
            pl.BlockSpec((1, 1, S), lambda b, p: (b, 0, 0)),                # additive mask
        ],
        out_specs=pl.BlockSpec((S, pair), lambda b, p: (b, p)),
        compiler_params=pltpu.CompilerParams(
            dimension_semantics=("parallel", "parallel"),
            vmem_limit_bytes=_VMEM_LIMIT),
    )(qkv, qkv, qkv, add_mask)


# --------------------------- fused pooler (dense+tanh) + head ----------------------------

def _pool_head_kernel(cls_ref, wp_ref, bp_ref, wc_ref, bc_ref, o_ref):
    cls = cls_ref[...].astype(jnp.bfloat16)
    pooled = jnp.tanh(
        jnp.dot(cls, wp_ref[...].astype(jnp.bfloat16), preferred_element_type=jnp.float32)
        + bp_ref[...].astype(jnp.float32))
    # dropout(p=0.3) on pooled output is an identity at inference time.
    logits = (jnp.dot(pooled.astype(jnp.bfloat16), wc_ref[...].astype(jnp.bfloat16),
                      preferred_element_type=jnp.float32)
              + bc_ref[...].astype(jnp.float32))
    o_ref[...] = logits


def pool_and_classify(cls, wp, bp, wc, bc):
    B, H = cls.shape
    C = wc.shape[1]
    return pl.pallas_call(
        _pool_head_kernel,
        out_shape=jax.ShapeDtypeStruct((B, C), jnp.float32),
        grid=(1,),
        in_specs=[
            pl.BlockSpec((B, H), lambda i: (0, 0)),
            pl.BlockSpec((H, H), lambda i: (0, 0)),
            pl.BlockSpec((1, H), lambda i: (0, 0)),
            pl.BlockSpec((H, C), lambda i: (0, 0)),
            pl.BlockSpec((1, C), lambda i: (0, 0)),
        ],
        out_specs=pl.BlockSpec((B, C), lambda i: (0, 0)),
        compiler_params=pltpu.CompilerParams(vmem_limit_bytes=_VMEM_LIMIT),
    )(cls, wp, bp.reshape(1, H), wc, bc.reshape(1, C))


# --------------------------------- parameter construction --------------------------------

def init_params(key, cfg):
    H, I, L, C = cfg["hidden"], cfg["intermediate"], cfg["layers"], cfg["num_classes"]
    dh = H // cfg["heads"]

    def nrm(k, shape, dtype=jnp.bfloat16):
        return (0.02 * jax.random.normal(k, shape, dtype=jnp.float32)).astype(dtype)

    keys = iter(jax.random.split(key, 8 + 8 * L))
    params = {
        "word_emb": nrm(next(keys), (cfg["vocab"], H), jnp.float32),
        "pos_emb": nrm(next(keys), (cfg["max_pos"], H), jnp.float32),
        "type_emb": nrm(next(keys), (2, H), jnp.float32),
        "emb_ln_g": jnp.ones((H,), jnp.float32),
        "emb_ln_b": jnp.zeros((H,), jnp.float32),
        "pool_w": nrm(next(keys), (H, H)),
        "pool_b": jnp.zeros((H,), jnp.float32),
        "cls_w": nrm(next(keys), (H, C)),
        "cls_b": jnp.zeros((C,), jnp.float32),
        "layers": [],
    }
    scale = 1.0 / math.sqrt(dh)
    for _ in range(L):
        # fused Q|K|V projection; fold the 1/sqrt(dh) attention scale into the Q columns
        # (one-time weight transform -> no per-token (S,S) scale multiply in the kernel).
        wqkv = 0.02 * jax.random.normal(next(keys), (H, 3 * H), jnp.float32)
        wqkv = wqkv.at[:, :H].multiply(scale)
        bqkv = jnp.zeros((3 * H,), jnp.float32).at[:H].multiply(scale)
        params["layers"].append({
            "wqkv": wqkv.astype(jnp.bfloat16), "bqkv": bqkv,
            "wo": nrm(next(keys), (H, H)), "bo": jnp.zeros((H,), jnp.float32),
            "ln1_g": jnp.ones((H,), jnp.float32), "ln1_b": jnp.zeros((H,), jnp.float32),
            "w1": nrm(next(keys), (H, I)), "b1": jnp.zeros((I,), jnp.float32),
            "w2": nrm(next(keys), (I, H)), "b2": jnp.zeros((H,), jnp.float32),
            "ln2_g": jnp.ones((H,), jnp.float32), "ln2_b": jnp.zeros((H,), jnp.float32),
        })
    return params


# -------------------------------------- forward pass -------------------------------------

def sentiment_classifier_forward(params, input_ids, attention_mask, cfg):
    B, S = input_ids.shape
    H, nh = cfg["hidden"], cfg["heads"]
    dh = H // nh

    # --- BERT embeddings (gathers are plain-JAX glue) ---
    word = jnp.take(params["word_emb"], input_ids, axis=0)            # (B, S, H)
    pos = params["pos_emb"][:S][None, :, :]                           # (1, S, H)
    tok = params["type_emb"][0][None, None, :]                        # token_type_ids = 0
    x = (word + pos + tok).astype(jnp.float32).reshape(B * S, H)
    x = layernorm(x, params["emb_ln_g"], params["emb_ln_b"])
    # TODO(synk): embedding / attention / hidden dropout skipped (eval-mode identity).

    # compact additive mask (B, 1, S); broadcast over query rows happens inside the kernel
    add_mask = ((1.0 - attention_mask.astype(jnp.float32)) * -10000.0).reshape(B, 1, S)

    # --- transformer encoder layers ---
    for layer in params["layers"]:
        qkv = linear(x, layer["wqkv"], layer["bqkv"])                  # (B*S, 3H)
        ctx = attention(qkv, add_mask, B, S, nh, dh)                   # (B*S, H)
        # attention output projection with residual add + LayerNorm fused into the epilogue
        x = linear_ln(ctx, layer["wo"], layer["bo"],
                      residual=x, g=layer["ln1_g"], beta=layer["ln1_b"])
        ff = linear(x, layer["w1"], layer["b1"], activation="gelu")
        # FFN down projection with residual add + LayerNorm fused into the epilogue
        x = linear_ln(ff, layer["w2"], layer["b2"],
                      residual=x, g=layer["ln2_g"], beta=layer["ln2_b"])

    # --- BERT pooler (dense + tanh on [CLS]) fused with the classifier head ---
    cls = x.reshape(B, S, H)[:, 0, :]                                  # (B, H)
    logits = pool_and_classify(cls, params["pool_w"], params["pool_b"],
                               params["cls_w"], params["cls_b"])
    # note: self.softmax is defined on the module but NOT applied in forward().
    return logits


# ------------------------------------------ main -----------------------------------------

if __name__ == "__main__":
    # Small demo config that keeps BERT's per-head width (dh=64) so the lane-aligned
    # head-pair attention path (2*dh = 128 lanes) is actually exercised.
    cfg = dict(vocab=100, hidden=128, heads=2, layers=2, intermediate=256,
               max_pos=32, num_classes=3)

    root = jax.random.PRNGKey(0)
    k_params, k_ids = jax.random.split(root)

    params = init_params(k_params, cfg)

    B, S = 2, 16
    input_ids = jax.random.randint(k_ids, (B, S), 0, cfg["vocab"], dtype=jnp.int32)
    attention_mask = jnp.ones((B, S), dtype=jnp.int32).at[1, 12:].set(0)

    logits = sentiment_classifier_forward(params, input_ids, attention_mask, cfg)
    jax.block_until_ready(logits)
    assert logits.shape == (B, cfg["num_classes"])
    print("KERNEL_OK")
</pallas_src>

<mosaic_0001>
module attributes {stable_mosaic.version = 11 : i64} {
  func.func @_layernorm_kernel(%arg0: i32, %arg1: memref<32x128xf32, #tpu.memory_space<vmem>>, %arg2: memref<1x128xf32, #tpu.memory_space<vmem>>, %arg3: memref<1x128xf32, #tpu.memory_space<vmem>>, %arg4: memref<32x128xbf16, #tpu.memory_space<vmem>>) attributes {dimension_semantics = [#tpu.dimension_semantics<parallel>], iteration_bounds = array<i64: 1>, scalar_prefetch = 0 : i64, scratch_operands = 0 : i64, tpu.core_type = #tpu.core_type<tc>, window_params = [{transform_indices = @transform_0, window_bounds = array<i64: 32, 128>}, {pipeline_mode = #tpu.pipeline_mode<synchronous>, transform_indices = @transform_1, window_bounds = array<i64: 1, 128>}, {pipeline_mode = #tpu.pipeline_mode<synchronous>, transform_indices = @transform_2, window_bounds = array<i64: 1, 128>}, {transform_indices = @transform_3, window_bounds = array<i64: 32, 128>}]} {
    %c0 = arith.constant 0 : index
    %c0_0 = arith.constant 0 : index
    %0 = vector.load %arg1[%c0, %c0_0] : memref<32x128xf32, #tpu.memory_space<vmem>>, vector<32x128xf32>
    %cst = arith.constant dense<0.000000e+00> : vector<32xf32>
    %1 = vector.multi_reduction <add>, %0, %cst [1] : vector<32x128xf32> to vector<32xf32>
    %2 = vector.shape_cast %1 : vector<32xf32> to vector<32x1xf32>
    %cst_1 = arith.constant 1.280000e+02 : f32
    %3 = vector.broadcast %cst_1 : f32 to vector<32x1xf32>
    %4 = arith.divf %2, %3 : vector<32x1xf32>
    %5 = vector.broadcast %4 : vector<32x1xf32> to vector<32x128xf32>
    %6 = arith.subf %0, %5 : vector<32x128xf32>
    %7 = arith.mulf %6, %6 : vector<32x128xf32>
    %cst_2 = arith.constant dense<0.000000e+00> : vector<32xf32>
    %8 = vector.multi_reduction <add>, %7, %cst_2 [1] : vector<32x128xf32> to vector<32xf32>
    %9 = vector.shape_cast %8 : vector<32xf32> to vector<32x1xf32>
    %cst_3 = arith.constant 1.280000e+02 : f32
    %10 = vector.broadcast %cst_3 : f32 to vector<32x1xf32>
    %11 = arith.divf %9, %10 : vector<32x1xf32>
    %cst_4 = arith.constant 9.99999996E-13 : f32
    %12 = vector.broadcast %cst_4 : f32 to vector<32x1xf32>
    %13 = arith.addf %11, %12 : vector<32x1xf32>
    %14 = math.rsqrt %13 : vector<32x1xf32>
    %15 = vector.broadcast %14 : vector<32x1xf32> to vector<32x128xf32>
    %16 = arith.mulf %6, %15 : vector<32x128xf32>
    %c0_5 = arith.constant 0 : index
    %c0_6 = arith.constant 0 : index
    %17 = vector.load %arg2[%c0_5, %c0_6] : memref<1x128xf32, #tpu.memory_space<vmem>>, vector<1x128xf32>
    %18 = vector.broadcast %17 : vector<1x128xf32> to vector<32x128xf32>
    %19 = arith.mulf %16, %18 : vector<32x128xf32>
    %c0_7 = arith.constant 0 : index
    %c0_8 = arith.constant 0 : index
    %20 = vector.load %arg3[%c0_7, %c0_8] : memref<1x128xf32, #tpu.memory_space<vmem>>, vector<1x128xf32>
    %21 = vector.broadcast %20 : vector<1x128xf32> to vector<32x128xf32>
    %22 = arith.addf %19, %21 : vector<32x128xf32>
    %23 = arith.truncf %22 : vector<32x128xf32> to vector<32x128xbf16>
    %c0_9 = arith.constant 0 : index
    %c0_10 = arith.constant 0 : index
    %24 = vector.load %arg4[%c0_9, %c0_10] : memref<32x128xbf16, #tpu.memory_space<vmem>>, vector<32x128xbf16>
    tpu.vector_store %arg4[%c0_9, %c0_10], %23 {strides = array<i32>} : memref<32x128xbf16, #tpu.memory_space<vmem>>, vector<32x128xbf16>,
    return
  }
  func.func @transform_0(%arg0: i32) -> (i32, i32) {
    %c0_i32 = arith.constant 0 : i32
    %c0_i32_0 = arith.constant 0 : i32
    return %arg0, %c0_i32 : i32, i32
  }
  func.func @transform_1(%arg0: i32) -> (i32, i32) {
    %c0_i32 = arith.constant 0 : i32
    %c0_i32_0 = arith.constant 0 : i32
    %c0_i32_1 = arith.constant 0 : i32
    return %c0_i32, %c0_i32_0 : i32, i32
  }
  func.func @transform_2(%arg0: i32) -> (i32, i32) {
    %c0_i32 = arith.constant 0 : i32
    %c0_i32_0 = arith.constant 0 : i32
    %c0_i32_1 = arith.constant 0 : i32
    return %c0_i32, %c0_i32_0 : i32, i32
  }
  func.func @transform_3(%arg0: i32) -> (i32, i32) {
    %c0_i32 = arith.constant 0 : i32
    %c0_i32_0 = arith.constant 0 : i32
    return %arg0, %c0_i32 : i32, i32
  }
}

</mosaic_0001>

<bundles_post_ra>
// kernel: tpu_custom_call.1
= control target key start
LH: loop header
LB: loop body
LE: loop exit
PB: predicated region body
PF: predicated region fallthrough
CT: control target
= control target key end

     0   :  { %8 = vsyncpa [#allocation3], 0  ;;  %s349_s0 = inlined_call_operand.hbm [shape: f32[32,128], index: 0, kind: input, shape index: {}]   ;;  %s350_s1 = inlined_call_operand.hbm [shape: f32[1,128], index: 1, kind: input, shape index: {}]   ;;  %s351_s2 = inlined_call_operand.vmem [shape: f32[1,128], index: 2, kind: input, shape index: {}]   ;;  %s352_s3 = inlined_call_operand.hbm [shape: bf16[32,128], index: 3, kind: output, shape index: {}]  }
   0x1   :  { %9 = vsyncpa [#allocation6], 0 }
   0x2   :  { %10 = vsyncpa [#allocation4], 0  ;;  %s15_s14 = sshll.u32 %s349_s0, 4  ;;  %s289_s15 = smov [#allocation2]   ;;  %s16_s14 = int_to_ptr.hbm [resolvable:$true] %s15_s14 }
   0x3   :  { %s17_s16 = sshll.u32 %s289_s15, 4  ;;  %s29_s19 = sshll.u32 %s350_s1, 4  ;;  %s18_s16 = int_to_ptr.vmem [resolvable:$true] %s17_s16  ;;  %s30_s19 = int_to_ptr.hbm [resolvable:$true] %s29_s19 }
   0x4   :  { %s290_s20 = smov 128   ;;  %s291_s21 = smov 8  }
   0x5   :  { %23 = dma.hbm_to_vmem [thread:$0]  %s16_s14, 512, %s18_s16, [#allocation3], %s290_s20, %s290_s20, %s291_s21  }
   0x6   :  { %s292_s22 = smov [#allocation5]  }
   0x7   :  { %s31_s23 = sshll.u32 %s292_s22, 4  ;;  %s32_s23 = int_to_ptr.vmem [resolvable:$true] %s31_s23 }
   0x8   :  { %34 = dma.hbm_to_vmem [thread:$0]  %s30_s19, 16, %s32_s23, [#allocation6]  }
   0x9   :  { %283 = dma.done.wait [#allocation3], 512  }
   0xa   :  { %284 = vsyncadd [#allocation3], 4294966784 }
   0xb   :  { %285 = dma.done.wait [#allocation6], 16  }
   0xc   :  { %286 = vsyncadd [#allocation6], 4294967280  ;;  %v47_v0 = vld [vmem:[#allocation2 + $0x10] sm:$0xff]  ;;  %v45_v1 = vld [vmem:[#allocation2] sm:$0xff]  ;;  %v293_v4 = vmov 128.0   ;;  %s294_s24 = smov [#allocation7]  }
   0xd   :  { %53 = vadd.xlane.f32.xlu1 %v47_v0  ;;  %49 = vadd.xlane.f32.xlu0 %v45_v1  ;;  %v48_v2 = vld [vmem:[#allocation2 + $0x18] sm:$0xff]  ;;  %v46_v3 = vld [vmem:[#allocation2 + $0x8] sm:$0xff]  ;;  %201 = vrcp.f32 %v293_v4  ;;  %v199_v62 = vld [vmem:[#allocation5] ss:$0 sm:$0xff]  ;;  %s164_s25 = sshll.u32 %s294_s24, 4  ;;  %s166_s28 = sshll.u32 %s352_s3, 4  ;;  %s165_s25 = int_to_ptr.vmem [resolvable:$true] %s164_s25  ;;  %s167_s28 = int_to_ptr.hbm [resolvable:$true] %s166_s28 }
   0xe   :  { %s296_s29 = smov 4  }
  0x13   :  { %v202_v5 = vpop.eup %201 }
  0x14   :  { %v58_v6 = vmul.f32 128.0, %v202_v5  ;;  %vm62_vm0 = vweird.f32 %v202_v5 }
  0x15   :  { %55 = vadd.xlane.f32.xlu1 %v48_v2  ;;  %51 = vadd.xlane.f32.xlu0 %v46_v3 }
  0x16   :  { %v59_v7 = vsub.f32 1.0, %v58_v6 }
  0x18   :  { %v60_v8 = vmul.f32 %v202_v5, %v59_v7 }
  0x1a   :  { %v61_v9 = vadd.f32 %v202_v5, %v60_v8 }
  0x1c   :  { %v63_v10 = vsel %vm62_vm0, %v202_v5, %v61_v9  ;;  %v200_v5 = vld [vmem:[%s351_s2] ss:$0 sm:$0xff]  ;;  %s295_s2 = smov 64  }
  0x80   :  { %v54_v11 = vpop.xlane.xlu1 %53  ;;  %v50_v12 = vpop.xlane.xlu0 %49 }
  0x81   :  { %v66_v13 = vmul.f32 %v63_v10, %v54_v11  ;;  %v64_v14 = vmul.f32 %v63_v10, %v50_v12 }
  0x83   :  { %v323_v15 = vsub.f32 %v47_v0, %v66_v13  ;;  %v325_v16 = vsub.f32 %v45_v1, %v64_v14 }
  0x85   :  { %v74_v17 = vmul.f32 %v323_v15, %v323_v15  ;;  %v72_v18 = vmul.f32 %v325_v16, %v325_v16 }
  0x87   :  { %80 = vadd.xlane.f32.xlu0 %v74_v17  ;;  %76 = vadd.xlane.f32.xlu2 %v72_v18 }
  0x88   :  { %v56_v19 = vpop.xlane.xlu1 %55  ;;  %v52_v20 = vpop.xlane.xlu0 %51 }
  0x89   :  { %v67_v21 = vmul.f32 %v63_v10, %v56_v19  ;;  %v65_v22 = vmul.f32 %v63_v10, %v52_v20 }
  0x8b   :  { %v331_v23 = vsub.f32 %v48_v2, %v67_v21  ;;  %v333_v24 = vsub.f32 %v46_v3, %v65_v22 }
  0x8d   :  { %v75_v25 = vmul.f32 %v331_v23, %v331_v23  ;;  %v73_v26 = vmul.f32 %v333_v24, %v333_v24 }
  0x8f   :  { %82 = vadd.xlane.f32.xlu1 %v75_v25  ;;  %78 = vadd.xlane.f32.xlu2 %v73_v26 }
  0xfa   :  { %v77_v27 = vpop.xlane.xlu2 %76  ;;  %v81_v28 = vpop.xlane.xlu0 %80 }
  0xfb   :  { %v84_v29 = vmul.f32 %v77_v27, %v63_v10  ;;  %v86_v30 = vmul.f32 %v81_v28, %v63_v10 }
  0xfd   :  { %v88_v31 = vadd.f32 1e-12, %v84_v29  ;;  %v90_v32 = vadd.f32 1e-12, %v86_v30 }
  0xff   :  { %203 = vrsqrt.f32 %v88_v31  ;;  %vm118_vm3 = vweird.f32 %v90_v32  ;;  %vm98_vm4 = vweird.f32 %v88_v31 }
 0x100   :  { %205 = vrsqrt.f32 %v90_v32 }
 0x102   :  { %v83_v33 = vpop.xlane.xlu1 %82  ;;  %v79_v34 = vpop.xlane.xlu2 %78 }
 0x103   :  { %v87_v35 = vmul.f32 %v83_v33, %v63_v10  ;;  %v85_v36 = vmul.f32 %v79_v34, %v63_v10 }
 0x105   :  { %v204_v37 = vpop.eup %203  ;;  %v91_v38 = vadd.f32 1e-12, %v87_v35  ;;  %v89_v39 = vadd.f32 1e-12, %v85_v36 }
 0x106   :  { %v206_v40 = vpop.eup %205  ;;  %v93_v41 = vmul.f32 %v204_v37, %v88_v31  ;;  %vm99_vm2 = vweird.f32 %v204_v37 }
 0x107   :  { %v113_v42 = vmul.f32 %v206_v40, %v90_v32  ;;  %207 = vrsqrt.f32 %v91_v38  ;;  %vm119_vm1 = vweird.f32 %v206_v40  ;;  %vm100_vm6 = vmor %vm98_vm4, %vm99_vm2  ;;  %vm128_vm9 = vweird.f32 %v91_v38 }
 0x108   :  { %v94_v43 = vmul.f32 %v204_v37, %v93_v41  ;;  %209 = vrsqrt.f32 %v89_v39  ;;  %vm120_vm5 = vmor %vm118_vm3, %vm119_vm1  ;;  %vm108_vm11 = vweird.f32 %v89_v39 }
 0x109   :  { %v114_v44 = vmul.f32 %v206_v40, %v113_v42 }
 0x10a   :  { %v95_v45 = vmul.f32 0.5, %v94_v43 }
 0x10b   :  { %v115_v46 = vmul.f32 0.5, %v114_v44 }
 0x10c   :  { %v96_v47 = vsub.f32 1.5, %v95_v45 }
 0x10d   :  { %v208_v48 = vpop.eup %207  ;;  %v116_v49 = vsub.f32 1.5, %v115_v46 }
 0x10e   :  { %v210_v50 = vpop.eup %209  ;;  %v123_v51 = vmul.f32 %v208_v48, %v91_v38  ;;  %v97_v52 = vmul.f32 %v204_v37, %v96_v47  ;;  %vm129_vm7 = vweird.f32 %v208_v48 }
 0x10f   :  { %v117_v53 = vmul.f32 %v206_v40, %v116_v49  ;;  %v103_v54 = vmul.f32 %v210_v50, %v89_v39  ;;  %vm109_vm8 = vweird.f32 %v210_v50  ;;  %vm130_vm10 = vmor %vm128_vm9, %vm129_vm7 }
 0x110   :  { %v124_v55 = vmul.f32 %v208_v48, %v123_v51  ;;  %v101_v59 = vsel %vm100_vm6, %v204_v37, %v97_v52  ;;  %vm110_vm12 = vmor %vm108_vm11, %vm109_vm8 }
 0x111   :  { %v104_v56 = vmul.f32 %v210_v50, %v103_v54  ;;  %v121_v57 = vsel %vm120_vm5, %v206_v40, %v117_v53  ;;  %v132_v1 = vmul.f32 %v101_v59, %v325_v16 }
 0x112   :  { %v125_v58 = vmul.f32 0.5, %v124_v55  ;;  %v134_v63 = vmul.f32 %v121_v57, %v323_v15 }
 0x113   :  { %v105_v60 = vmul.f32 0.5, %v104_v56  ;;  %v140_v9 = vmul.f32 %v199_v62, %v132_v1 }
 0x114   :  { %v126_v61 = vsub.f32 1.5, %v125_v58  ;;  %v142_v6 = vmul.f32 %v199_v62, %v134_v63 }
 0x115   :  { %v106_v0 = vsub.f32 1.5, %v105_v60  ;;  %v148_v15 = vadd.f32 %v200_v5, %v140_v9 }
 0x116   :  { %v127_v2 = vmul.f32 %v208_v48, %v126_v61  ;;  %v150_v13 = vadd.f32 %v200_v5, %v142_v6 }
 0x117   :  { %v107_v3 = vmul.f32 %v210_v50, %v106_v0 }
 0x118   :  { %v131_v4 = vsel %vm130_vm10, %v208_v48, %v127_v2 }
 0x119   :  { %v135_v7 = vmul.f32 %v131_v4, %v331_v23  ;;  %v111_v8 = vsel %vm110_vm12, %v210_v50, %v107_v3 }
 0x11a   :  { %v133_v10 = vmul.f32 %v111_v8, %v333_v24 }
 0x11b   :  { %v143_v11 = vmul.f32 %v199_v62, %v135_v7 }
 0x11c   :  { %v141_v12 = vmul.f32 %v199_v62, %v133_v10 }
 0x11d   :  { %v151_v14 = vadd.f32 %v200_v5, %v143_v11 }
 0x11e   :  { %v149_v16 = vadd.f32 %v200_v5, %v141_v12 }
 0x11f   :  { %v188_v17 = vpack.c.bf16 %v151_v14, %v150_v13 }
 0x120   :  { %v183_v18 = vpack.c.bf16 %v149_v16, %v148_v15 }
 0x121   :  { %190 = vst [vmem:[#allocation7 + $0x8] sm:$0xff] %v188_v17  }
 0x122   :  { %184 = vst [vmem:[#allocation7] sm:$0xff] %v183_v18  }
 0x123   :  { %172 = dma.vmem_to_hbm [thread:$0]  %s165_s25, 256, %s167_s28, [#allocation4], %s295_s2, %s295_s2, %s296_s29  }
 0x124   :  { %287 = dma.done.wait [#allocation4], 256  }
 0x125   :  { %288 = vsyncadd [#allocation4], 4294967040 }
 0x126   :  { %177 = vsyncpa [#allocation3], 1 }
 0x127   :  { %178 = vsyncpa [#allocation6], 1 }
 0x128   :  { %179 = vsyncpa [#allocation4], 1 }

</bundles_post_ra>
